<compile_context>
chip_gen: v5e
topology: v5e:2x2
jax: 0.10.0
libtpu: 0.0.40
codegen_flags: <defaults>
</compile_context>

<pallas_src>
import functools

import jax
import jax.numpy as jnp
from jax.experimental import pallas as pl
from jax.experimental.pallas import tpu as pltpu

EPS = 1e-5
_MIB = 1 << 20


def _round_up(n, m):
    return ((n + m - 1) // m) * m


@functools.lru_cache(maxsize=None)
def _vmem_capacity_bytes():
    try:
        return int(pltpu.get_tpu_info().vmem_capacity_bytes)
    except Exception:
        return 64 * _MIB  # conservative fallback: safe on every generation


def _layernorm_kernel(x_ref, w_ref, *refs, has_bias):
    if has_bias:
        b_ref, o_ref = refs
    else:
        (o_ref,) = refs
        b_ref = None

    x = x_ref[...].astype(jnp.float32)                     # (block_rows, D)
    d = x.shape[-1]
    inv_d = jnp.float32(1.0 / d)

    # Single pass over x: row sum and row sum-of-squares.
    s1 = jnp.sum(x, axis=-1, keepdims=True)                # (block_rows, 1)
    s2 = jnp.sum(x * x, axis=-1, keepdims=True)
    mean = s1 * inv_d
    # Biased variance (matches torch); clamp for numerical safety.
    var = jnp.maximum(s2 * inv_d - mean * mean, 0.0)
    inv = jax.lax.rsqrt(var + EPS)

    y = (x - mean) * inv * w_ref[...].astype(jnp.float32)  # (1, D) broadcasts
    if has_bias:
        y = y + b_ref[...].astype(jnp.float32)
    o_ref[...] = y.astype(o_ref.dtype)


@functools.partial(jax.jit, static_argnames=("block_rows",))
def layer_norm(x, weight, bias=None, *, block_rows=None):
    """LayerNorm over the last axis of x; weight/bias shape (D,), bias optional."""
    orig_shape = x.shape
    d = orig_shape[-1]
    n_rows = 1
    for s in orig_shape[:-1]:
        n_rows *= s
    x2 = x.reshape(n_rows, d)
    w2 = weight.reshape(1, d)

    itemsize = jnp.dtype(x.dtype).itemsize

    # Per-generation VMEM budget (~75% of physical): ~96 MiB v5e/v6e, ~48 MiB v7x.
    vmem_budget = int(_vmem_capacity_bytes() * 0.75)

    # Per-row VMEM cost: double-buffered input + output blocks (2*2*itemsize)
    # plus ~3 fp32 temporaries live in the body.
    per_row = d * (4 * itemsize + 3 * 4)

    if block_rows is None:
        # ~8 MiB of input per grid step keeps the ~0.35 us per-step overhead
        # well under 10% even at v7x's 3.2 TB/s HBM bandwidth.
        rows_bw = (8 * _MIB) // max(d * itemsize, 1)
        rows_vmem = max(vmem_budget // per_row, 8)
        block_rows = min(rows_bw, rows_vmem)
        # Keep >= ~4 grid steps when the row count allows it (pipelining and
        # megacore sharding on v7x), but never below 8 rows per block.
        rows_for_4_steps = _round_up(pl.cdiv(n_rows, 4), 8)
        block_rows = min(block_rows, rows_for_4_steps)
    # Validate / round (covers user-supplied values too).
    block_rows = max(8, (int(block_rows) // 8) * 8)
    block_rows = min(block_rows, _round_up(n_rows, 8))

    grid = (pl.cdiv(n_rows, block_rows),)

    est_vmem = block_rows * per_row + 2 * _MIB
    vmem_limit = int(min(max(est_vmem, 32 * _MIB), vmem_budget))

    has_bias = bias is not None
    kernel = functools.partial(_layernorm_kernel, has_bias=has_bias)

    in_specs = [
        pl.BlockSpec((block_rows, d), lambda i: (i, 0)),
        pl.BlockSpec((1, d), lambda i: (0, 0)),
    ]
    args = [x2, w2]
    if has_bias:
        in_specs.append(pl.BlockSpec((1, d), lambda i: (0, 0)))
        args.append(bias.reshape(1, d))

    out = pl.pallas_call(
        kernel,
        out_shape=jax.ShapeDtypeStruct((n_rows, d), x.dtype),
        grid_spec=pltpu.PrefetchScalarGridSpec(
            num_scalar_prefetch=0,
            grid=grid,
            in_specs=in_specs,
            out_specs=pl.BlockSpec((block_rows, d), lambda i: (i, 0)),
        ),
        compiler_params=pltpu.CompilerParams(
            dimension_semantics=("parallel",),
            vmem_limit_bytes=vmem_limit,
        ),
    )(*args)

    return out.reshape(orig_shape)


def _ref_layer_norm(x, w, b):
    mean = jnp.mean(x, axis=-1, keepdims=True)
    var = jnp.mean((x - mean) ** 2, axis=-1, keepdims=True)
    y = (x - mean) / jnp.sqrt(var + EPS) * w
    return y + b if b is not None else y


if __name__ == "__main__":
    key = jax.random.PRNGKey(0)
    B, S, D = 2, 8, 32
    x = jax.random.normal(key, (B, S, D), dtype=jnp.float32)

    # nn.Parameter(torch.ones(ndim)) / torch.zeros(ndim)
    weight = jnp.ones((D,), dtype=jnp.float32)
    bias = jnp.zeros((D,), dtype=jnp.float32)

    # bias=True path
    y = layer_norm(x, weight, bias)
    jax.block_until_ready(y)
    assert jnp.allclose(y, _ref_layer_norm(x, weight, bias), atol=1e-5, rtol=1e-5), \
        "mismatch vs reference (bias)"

    # bias=None path (specialized kernel variant)
    y_nb = layer_norm(x, weight, None)
    jax.block_until_ready(y_nb)
    assert jnp.allclose(y_nb, _ref_layer_norm(x, weight, None), atol=1e-5, rtol=1e-5), \
        "mismatch vs reference (no bias)"

    # Robustness: ragged row count + hidden dim not a multiple of 128
    # (exercises the ragged last row block and the full-D unaligned last dim,
    # now without any pad/slice HBM round-trip).
    x3 = jax.random.normal(jax.random.PRNGKey(1), (3, 5, 160), dtype=jnp.float32)
    w3 = jax.random.normal(jax.random.PRNGKey(2), (160,), dtype=jnp.float32)
    b3 = jax.random.normal(jax.random.PRNGKey(3), (160,), dtype=jnp.float32)
    y3 = layer_norm(x3, w3, b3)
    jax.block_until_ready(y3)
    assert jnp.allclose(y3, _ref_layer_norm(x3, w3, b3), atol=1e-5, rtol=1e-5), \
        "mismatch vs reference (ragged/unaligned)"

    # Non-trivial weights with random data and bf16 input path.
    x4 = jax.random.normal(jax.random.PRNGKey(4), (4, 16, 256), dtype=jnp.bfloat16)
    w4 = jax.random.normal(jax.random.PRNGKey(5), (256,), dtype=jnp.float32)
    b4 = jax.random.normal(jax.random.PRNGKey(6), (256,), dtype=jnp.float32)
    y4 = layer_norm(x4, w4, b4)
    jax.block_until_ready(y4)
    ref4 = _ref_layer_norm(x4.astype(jnp.float32), w4, b4)
    assert jnp.allclose(y4.astype(jnp.float32), ref4, atol=2e-2, rtol=2e-2), \
        "mismatch vs reference (bf16)"

    print("KERNEL_OK")
</pallas_src>

<mosaic_0001>
module attributes {stable_mosaic.version = 11 : i64} {
  func.func @_layernorm_kernel(%arg0: i32, %arg1: memref<8x32xf32, #tpu.memory_space<vmem>>, %arg2: memref<1x32xf32, #tpu.memory_space<vmem>>, %arg3: memref<1x32xf32, #tpu.memory_space<vmem>>, %arg4: memref<8x32xf32, #tpu.memory_space<vmem>>) attributes {dimension_semantics = [#tpu.dimension_semantics<parallel>], iteration_bounds = array<i64: 2>, scalar_prefetch = 0 : i64, scratch_operands = 0 : i64, tpu.core_type = #tpu.core_type<tc>, window_params = [{transform_indices = @transform_0, window_bounds = array<i64: 8, 32>}, {pipeline_mode = #tpu.pipeline_mode<synchronous>, transform_indices = @transform_1, window_bounds = array<i64: 1, 32>}, {pipeline_mode = #tpu.pipeline_mode<synchronous>, transform_indices = @transform_2, window_bounds = array<i64: 1, 32>}, {transform_indices = @transform_3, window_bounds = array<i64: 8, 32>}]} {
    %c0 = arith.constant 0 : index
    %c0_0 = arith.constant 0 : index
    %0 = vector.load %arg1[%c0, %c0_0] : memref<8x32xf32, #tpu.memory_space<vmem>>, vector<8x32xf32>
    %cst = arith.constant dense<0.000000e+00> : vector<8xf32>
    %1 = vector.multi_reduction <add>, %0, %cst [1] : vector<8x32xf32> to vector<8xf32>
    %2 = vector.shape_cast %1 : vector<8xf32> to vector<8x1xf32>
    %3 = arith.mulf %0, %0 : vector<8x32xf32>
    %cst_1 = arith.constant dense<0.000000e+00> : vector<8xf32>
    %4 = vector.multi_reduction <add>, %3, %cst_1 [1] : vector<8x32xf32> to vector<8xf32>
    %5 = vector.shape_cast %4 : vector<8xf32> to vector<8x1xf32>
    %cst_2 = arith.constant 3.125000e-02 : f32
    %6 = vector.broadcast %cst_2 : f32 to vector<8x1xf32>
    %7 = arith.mulf %2, %6 : vector<8x1xf32>
    %cst_3 = arith.constant 3.125000e-02 : f32
    %8 = vector.broadcast %cst_3 : f32 to vector<8x1xf32>
    %9 = arith.mulf %5, %8 : vector<8x1xf32>
    %10 = arith.mulf %7, %7 : vector<8x1xf32>
    %11 = arith.subf %9, %10 : vector<8x1xf32>
    %cst_4 = arith.constant 0.000000e+00 : f32
    %12 = vector.broadcast %cst_4 : f32 to vector<8x1xf32>
    %13 = arith.maximumf %11, %12 : vector<8x1xf32>
    %cst_5 = arith.constant 9.99999974E-6 : f32
    %14 = vector.broadcast %cst_5 : f32 to vector<8x1xf32>
    %15 = arith.addf %13, %14 : vector<8x1xf32>
    %16 = math.rsqrt %15 : vector<8x1xf32>
    %17 = vector.broadcast %7 : vector<8x1xf32> to vector<8x32xf32>
    %18 = arith.subf %0, %17 : vector<8x32xf32>
    %19 = vector.broadcast %16 : vector<8x1xf32> to vector<8x32xf32>
    %20 = arith.mulf %18, %19 : vector<8x32xf32>
    %c0_6 = arith.constant 0 : index
    %c0_7 = arith.constant 0 : index
    %21 = vector.load %arg2[%c0_6, %c0_7] : memref<1x32xf32, #tpu.memory_space<vmem>>, vector<1x32xf32>
    %22 = vector.broadcast %21 : vector<1x32xf32> to vector<8x32xf32>
    %23 = arith.mulf %20, %22 : vector<8x32xf32>
    %c0_8 = arith.constant 0 : index
    %c0_9 = arith.constant 0 : index
    %24 = vector.load %arg3[%c0_8, %c0_9] : memref<1x32xf32, #tpu.memory_space<vmem>>, vector<1x32xf32>
    %25 = vector.broadcast %24 : vector<1x32xf32> to vector<8x32xf32>
    %26 = arith.addf %23, %25 : vector<8x32xf32>
    %c0_10 = arith.constant 0 : index
    %c0_11 = arith.constant 0 : index
    %27 = vector.load %arg4[%c0_10, %c0_11] : memref<8x32xf32, #tpu.memory_space<vmem>>, vector<8x32xf32>
    tpu.vector_store %arg4[%c0_10, %c0_11], %26 {strides = array<i32>} : memref<8x32xf32, #tpu.memory_space<vmem>>, vector<8x32xf32>,
    return
  }
  func.func @transform_0(%arg0: i32) -> (i32, i32) {
    %c0_i32 = arith.constant 0 : i32
    %c0_i32_0 = arith.constant 0 : i32
    return %arg0, %c0_i32 : i32, i32
  }
  func.func @transform_1(%arg0: i32) -> (i32, i32) {
    %c0_i32 = arith.constant 0 : i32
    %c0_i32_0 = arith.constant 0 : i32
    %c0_i32_1 = arith.constant 0 : i32
    return %c0_i32, %c0_i32_0 : i32, i32
  }
  func.func @transform_2(%arg0: i32) -> (i32, i32) {
    %c0_i32 = arith.constant 0 : i32
    %c0_i32_0 = arith.constant 0 : i32
    %c0_i32_1 = arith.constant 0 : i32
    return %c0_i32, %c0_i32_0 : i32, i32
  }
  func.func @transform_3(%arg0: i32) -> (i32, i32) {
    %c0_i32 = arith.constant 0 : i32
    %c0_i32_0 = arith.constant 0 : i32
    return %arg0, %c0_i32 : i32, i32
  }
}

</mosaic_0001>

<bundles_post_ra>
// kernel: layer_norm.1
= control target key start
LH: loop header
LB: loop body
LE: loop exit
PB: predicated region body
PF: predicated region fallthrough
CT: control target
= control target key end

     0   :  { %8 = vsyncpa [#allocation3], 0  ;;  %s632_s0 = inlined_call_operand.hbm [shape: f32[16,32], index: 0, kind: input, shape index: {}]   ;;  %s633_s1 = inlined_call_operand.vmem [shape: f32[1,32], index: 1, kind: input, shape index: {}]   ;;  %s634_s2 = inlined_call_operand.vmem [shape: f32[1,32], index: 2, kind: input, shape index: {}]   ;;  %s635_s3 = inlined_call_operand.hbm [shape: f32[16,32], index: 3, kind: output, shape index: {}]  }
   0x1   :  { %10 = vsyncpa [#allocation3 + $0x1], 0 }
   0x2   :  { %11 = vsyncpa [#allocation4], 0 }
   0x3   :  { %13 = vsyncpa [#allocation4 + $0x1], 0  ;;  %s492_s12 = smov 0   ;;  %s494_s13 = smov 0  }
   0x4   :  { %s496_s14 = smov 0   ;;  %s498_s15 = smov 0  }
   0x5 LB: > { %s513_s16 = sadd.s32 4294967295, %s470_s15   ;;  %s312_s17 = sadd.s32 4294967294, %s470_s15   ;;  %s470_s15 = sphi %s498_s15, %s645_s15   ;;  %s466_s14 = sphi %s496_s14, %s644_s14   ;;  %s462_s13 = sphi %s494_s13, %s643_s13   ;;  %s458_s12 = sphi %s492_s12, %s642_s12  }
   0x6   : > { %s517_s18 = sadd.s32 1, %s470_s15   ;;  %s26_s19 = sadd.s32 1, %s466_s14 }
   0x7   : > { %s23_s20 = ssub.s32 %s470_s15, %s517_s18  ;;  %p33_p0 = scmp.ne.s32.totalorder %s466_s14, %s462_s13 }
   0x8   : > { %p24_p1 = scmp.eq.s32.totalorder %s23_s20, 0  ;;  %p34_p2 = scmp.eq.s32.totalorder %s470_s15, 0 }
   0x9   : > { %p39_p3 = scmp.ne.s32.totalorder %s462_s13, %s458_s12  ;;  %p40_p4 = scmp.eq.s32.totalorder %s513_s16, 0 }
   0xa   : > { %s529_s21 = scalar_select %p24_p1, %s466_s14, %s26_s19  }
   0xb   : > { %p531_p5 = por %p34_p2, %p33_p0  ;;  %p535_p6 = por %p40_p4, %p39_p3 }
   0xc   : > { %p105_p7 = scmp.eq.s32.totalorder %s513_s16, 1  ;;  %p111_p8 = scmp.eq.s32.totalorder %s312_s17, 1 }
   0xd   : > { %p336_p10 = scmp.lt.s32.totalorder %s470_s15, 2  ;;  %s137_s26 = sand.u32 1, %s466_s14  }
   0xe   : > { %p542_p11 = por %p105_p7, %p33_p0  ;;  %p546_p12 = por %p111_p8, %p39_p3 }
   0xf   : > { %s316_s27 = sshll.u32 %s470_s15, 3  ;;  %s315_s28 = sshll.u32 %s137_s26, 3 }
  0x10   : > { %s145_s4 = scalar_lea.hbm %s632_s0, %s316_s27  ;;  %s141_s6 = scalar_lea.vmem [#allocation2], %s315_s28 }
  0x11   : > { %s147_s5 = sshll.u32 %s145_s4, 4  ;;  %s149_s7 = sshll.u32 %s141_s6, 4  ;;  %s148_s5 = int_to_ptr.hbm [resolvable:$true] %s147_s5  ;;  %s150_s7 = int_to_ptr.vmem [resolvable:$true] %s149_s7 }
  0x12   : > { %p557_p13 = pnand %p336_p10, %p531_p5  ;;  %p317_p0 = scmp.ge.s32.totalorder %s470_s15, 1 }
  0x13   : > { %p154_p1 = scmp.lt.s32.totalorder %s470_s15, 3  ;;  %s138_s9 = scalar_lea.sflag [#allocation3], %s137_s26 }
  0x14   : > { %s374_s10 = sshra.s32 %s148_s5, 4  ;;  %p378_p3 = pneg %p557_p13  ;;  %s375_s10 = int_to_ptr.hbm [resolvable:$true] %s374_s10 }
  0x15   : > { %s376_s11 = scalar_lea.hbm %s375_s10, 8  ;;  %s381_s20 = scalar_lea.hbm %s632_s0, 16 }
  0x16   : > { %p377_p2 = scmp.ne.s32.totalorder %s375_s10, %s376_s11  ;;  %p382_p5 = scmp.lt.s32.totalorder %s375_s10, %s632_s0 }
  0x17   : > { %p383_p8 = scmp.lt.s32.totalorder %s381_s20, %s376_s11 }
  0x18   : > { %p379_p4 = pnand %p378_p3, %p377_p2 }
  0x19   : > { %p384_p10 = por %p383_p8, %p382_p5 }
  0x1a   : > { %p380_p7 = pneg %p379_p4 }
  0x1c   : > { %p385_p9 = pnand %p384_p10, %p380_p7 }
  0x1e   : > { %388 = shalt.err (!%p385_p9)
}
  0x1f   : > { %331 = dma.hbm_to_vmem [thread:$0]  (!%p557_p13), %s148_s5, 128, %s150_s7, %s138_s9  }
  0x20   : > { %p155_p2 = pnand %p317_p0, %p154_p1 }
  0x21   : > { %s578_s26 = sand.u32 (!%p155_p2), 1, %s462_s13  }
  0x22   : > { %158 = sbr.rel (%p155_p2) target bundleno = 201 (0xc9), region = 32  ;;  %s318_s28 = sshll.u32 (!%p155_p2), %s578_s26, 3 }
  0x23   : > { %s161_s29 = scalar_lea.sflag (!%p155_p2), [#allocation3], %s578_s26  ;;  %s164_s30 = scalar_lea.vmem (!%p155_p2), [#allocation2], %s318_s28 }
  0x27   : > { %449 = dma.done.wait (%p535_p6), %s161_s29, 128  }
  0x28   : > { %451 = vsyncadd (%p535_p6), %s161_s29, 4294967168  ;;  %vm189_vm0 = vcmask 261120   ;;  %v188_v0 = vld [vmem:[%s164_s30] sm:$0xff]  ;;  %s321_s23 = sshll.u32 %s513_s16, 3  ;;  %s187_s16 = scalar_lea.vmem [#allocation5], %s318_s28 }
  0x29   : > { %v190_v1 = vsel %vm189_vm0, %v188_v0, 0.0  ;;  %v193_v2 = vmul.f32 %v188_v0, %v188_v0  ;;  %v370_v19 = vld [vmem:[%s633_s1] ss:$0 sm:$0xff]  ;;  %s237_s8 = scalar_lea.hbm %s635_s3, %s321_s23  ;;  %s239_s11 = sshll.u32 %s187_s16, 4  ;;  %s240_s11 = int_to_ptr.vmem [resolvable:$true] %s239_s11 }
  0x2a   : > { %191 = vadd.xlane.f32.xlu0 %v190_v1  ;;  %v371_v22 = vld [vmem:[%s634_s2] ss:$0 sm:$0xff]  ;;  %s241_s17 = sshll.u32 %s237_s8, 4  ;;  %s227_s19 = scalar_lea.sflag [#allocation4], %s578_s26  ;;  %s242_s17 = int_to_ptr.hbm [resolvable:$true] %s241_s17 }
  0x2b   : > { %v194_v3 = vsel %vm189_vm0, %v193_v2, 0.0  ;;  %s418_s20 = sshra.s32 %s242_s17, 4  ;;  %s424_s28 = scalar_lea.hbm %s635_s3, 16  ;;  %s419_s20 = int_to_ptr.hbm [resolvable:$true] %s418_s20 }
  0x2c   : > { %s420_s22 = scalar_lea.hbm %s419_s20, 8  ;;  %p425_p0 = scmp.lt.s32.totalorder %s419_s20, %s635_s3 }
  0x2d   : > { %p421_p6 = scmp.ne.s32.totalorder %s419_s20, %s420_s22  ;;  %p426_p1 = scmp.lt.s32.totalorder %s424_s28, %s420_s22 }
  0x2f   : > { %p422_p9 = pnand %p421_p6, %p542_p11  ;;  %p427_p3 = por %p426_p1, %p425_p0 }
  0x31   : > { %p423_p13 = pneg %p422_p9 }
  0x32   : > { %195 = vadd.xlane.f32.xlu0 %v194_v3 }
  0x33   : > { %p428_p4 = pnand %p427_p3, %p423_p13 }
  0x9d   : > { %v192_v4 = vpop.xlane.xlu0 %191 }
  0x9e   : > { %v197_v5 = vmul.f32 0.03125, %v192_v4 }
  0xa0   : > { %v199_v7 = vmul.f32 %v197_v5, %v197_v5  ;;  %v213_v18 = vsub.f32 %v188_v0, %v197_v5 }
  0xa5   : > { %v196_v6 = vpop.xlane.xlu0 %195 }
  0xa6   : > { %v198_v8 = vmul.f32 0.03125, %v196_v6 }
  0xa8   : > { %v200_v9 = vsub.f32 %v198_v8, %v199_v7 }
  0xaa   : > { %v201_v10 = vmax.f32 %v200_v9, 0.0 }
  0xac   : > { %v202_v11 = vadd.f32 1e-05, %v201_v10 }
  0xae   : > { %372 = vrsqrt.f32 %v202_v11  ;;  %vm209_vm2 = vweird.f32 %v202_v11 }
  0xb4   : > { %v373_v12 = vpop.eup %372 }
  0xb5   : > { %v204_v13 = vmul.f32 %v373_v12, %v202_v11  ;;  %vm210_vm1 = vweird.f32 %v373_v12 }
  0xb6   : > { %vm211_vm3 = vmor %vm209_vm2, %vm210_vm1 }
  0xb7   : > { %v205_v14 = vmul.f32 %v373_v12, %v204_v13 }
  0xb9   : > { %v206_v15 = vmul.f32 0.5, %v205_v14 }
  0xbb   : > { %v207_v16 = vsub.f32 1.5, %v206_v15 }
  0xbd   : > { %v208_v17 = vmul.f32 %v373_v12, %v207_v16 }
  0xbf   : > { %v212_v20 = vsel %vm211_vm3, %v373_v12, %v208_v17 }
  0xc0   : > { %v214_v21 = vmul.f32 %v213_v18, %v212_v20 }
  0xc2   : > { %v219_v23 = vmul.f32 %v370_v19, %v214_v21 }
  0xc4   : > { %v224_v24 = vadd.f32 %v371_v22, %v219_v23 }
  0xc6   : > { %225 = vst.msk [vmem:[%s187_s16] sm:$0xff] %vm189_vm0, %v224_v24 }
  0xc7   : > { %431 = shalt.err (!%p428_p4)
}
  0xc8   : > { %326 = dma.vmem_to_hbm [thread:$0]  (%p542_p11), %s240_s11, 128, %s242_s17, %s227_s19  }
  0xc9 PF: > { %s253_s26 = sand.u32 1, %s458_s12   ;;  %p641_p7 = scmp.ge.s32.totalorder %s470_s15, 2 }
  0xca   : > { %s254_s4 = scalar_lea.sflag [#allocation4], %s253_s26 }
  0xcb   : > { %p333_p5 = pnand %p641_p7, %p546_p12 }
  0xcd   : > { %p334_p8 = pneg %p333_p5 }
  0xcf   : > { %453 = dma.done.wait (%p334_p8), %s254_s4, 128  }
  0xd0   : > { %455 = vsyncadd (%p334_p8), %s254_s4, 4294967168  ;;  %p16_p10 = scmp.ge.s32.totalorder %s517_s18, 4   ;;  %s642_s12 = smov %s462_s13 }
  0xd1   : > { %s643_s13 = smov %s466_s14  ;;  %s644_s14 = smov %s529_s21 }
  0xd2   : > { %s645_s15 = smov %s517_s18  ;;  %18 = sbr.rel (!%p16_p10) target bundleno = 5 (0x5), region = 77 }
  0xd7   :  { %260 = vsyncpa [#allocation3], 1 }
  0xd8   :  { %262 = vsyncpa [#allocation3 + $0x1], 1 }
  0xd9   :  { %263 = vsyncpa [#allocation4], 1 }
  0xda   :  { %265 = vsyncpa [#allocation4 + $0x1], 1 }

</bundles_post_ra>
